<compile_context>
chip_gen: v6e
topology: v6e:2x2x1
jax: 0.10.0
libtpu: 0.0.40
codegen_flags: <defaults>
</compile_context>

<pallas_src>
import jax
import jax.numpy as jnp
from jax.experimental import pallas as pl
from jax.experimental.pallas import tpu as pltpu

LANES = 128            # vreg lane width
MAX_TILE_ROWS = 4096   # rows per grid step cap (f32 block = 4096*128*4 B = 2 MiB)
SUBLANES = 8


def _linear_kernel(w_ref, b_ref, x_ref, o_ref):
    # w_ref / b_ref: (1, 1) scalars in SMEM.  x_ref / o_ref: (tile_rows, LANES) VMEM tiles.
    w = w_ref[0, 0]
    b = b_ref[0, 0]
    o_ref[...] = (x_ref[...] * w + b).astype(o_ref.dtype)


def _choose_tile_rows(rows):
    """Pick a row-tile size.

    - multiple of 8 (sublane) unless it equals the full row extent,
    - capped at MAX_TILE_ROWS (2 MiB f32 block: DMA-efficiency plateau),
    - when there is enough work, small enough that the grid has >= 2 steps
      so v7x's two TensorCores both get tiles.
    """
    if rows <= SUBLANES:
        return rows                      # single tiny block == full extent
    half = (rows + 1) // 2
    half = ((half + SUBLANES - 1) // SUBLANES) * SUBLANES
    return min(MAX_TILE_ROWS, half) if half < MAX_TILE_ROWS else MAX_TILE_ROWS


def _forward_pallas(flat, n, dtype, w_smem, b_smem):
    # flat: 1-D (N,) array.  Pad only to a multiple of LANES (128), never to a
    # whole tile; Pallas masks the partial last row-tile.
    pad = (-n) % LANES
    if pad > 0:
        flat = jnp.pad(flat, (0, pad))
    rows = (n + pad) // LANES
    slab = flat.reshape(rows, LANES)

    tile_rows = _choose_tile_rows(rows)
    grid = (pl.cdiv(rows, tile_rows),)

    out = pl.pallas_call(
        _linear_kernel,
        out_shape=jax.ShapeDtypeStruct((rows, LANES), dtype),
        grid_spec=pl.GridSpec(
            grid=grid,
            in_specs=[
                pl.BlockSpec(memory_space=pltpu.SMEM),               # weight scalar
                pl.BlockSpec(memory_space=pltpu.SMEM),               # bias scalar
                pl.BlockSpec((tile_rows, LANES), lambda i: (i, 0)),  # input tile
            ],
            out_specs=pl.BlockSpec((tile_rows, LANES), lambda i: (i, 0)),
        ),
        compiler_params=pltpu.CompilerParams(
            dimension_semantics=("parallel",),
        ),
    )(w_smem, b_smem, slab)

    if pad == 0:
        # 128-aligned N: pure reshape, no slice => no extra HBM pass.
        return out.reshape(n, 1)
    return out.reshape(-1)[:n].reshape(n, 1)


def logistic_reg_forward(x, weight, bias, *, use_pallas=None):
    """Pallas equivalent of nn.Linear(1, 1) applied to x of shape (N, 1) or (N,).

    weight: (1, 1) float32, bias: (1,) float32 (PyTorch Linear parameter shapes).
    Returns (N, 1), matching the module's forward.
    use_pallas: None -> auto (Pallas only when N is large enough to amortize the
    relayout + launch overhead); True/False forces the path.
    """
    if x.ndim == 2:
        assert x.shape[1] == 1, "expected (N, 1) input"
        n = x.shape[0]
        flat = x.reshape(-1)
    else:
        assert x.ndim == 1, "expected (N,) or (N, 1) input"
        n = x.shape[0]
        flat = x
    dtype = x.dtype

    w_smem = weight.reshape(1, 1).astype(jnp.float32)
    b_smem = bias.reshape(1, 1).astype(jnp.float32)

    if use_pallas is None:
        # Require at least a couple of full 2 MiB tiles of work before paying
        # the relayout + Pallas launch cost.
        use_pallas = n >= 2 * MAX_TILE_ROWS * LANES

    if not use_pallas:
        # Tiny-N fast path: plain XLA elementwise; kernel overhead would dominate.
        y = flat * w_smem[0, 0] + b_smem[0, 0]
        return y.astype(dtype).reshape(n, 1)

    return _forward_pallas(flat, n, dtype, w_smem, b_smem)


def init_params(key):
    # Deterministic init mimicking PyTorch nn.Linear(1, 1):
    # weight, bias ~ U(-1/sqrt(in_features), 1/sqrt(in_features)) = U(-1, 1).
    kw, kb = jax.random.split(key)
    weight = jax.random.uniform(kw, (1, 1), jnp.float32, minval=-1.0, maxval=1.0)
    bias = jax.random.uniform(kb, (1,), jnp.float32, minval=-1.0, maxval=1.0)
    return weight, bias


if __name__ == "__main__":
    key = jax.random.PRNGKey(0)
    k_param, k_small, k_aligned, k_ragged = jax.random.split(key, 4)
    weight, bias = init_params(k_param)

    # Case 1: tiny batch (typical module use) -> XLA fallback path.
    x_small = jax.random.normal(k_small, (8, 1), jnp.float32)
    y_small = jax.block_until_ready(logistic_reg_forward(x_small, weight, bias))
    ref_small = x_small @ weight.T + bias
    assert y_small.shape == (8, 1)
    assert jnp.allclose(y_small, ref_small, atol=1e-6), "small-N mismatch vs reference"

    # Case 2: force Pallas, 128-aligned N -> no pad, no output slice.
    x_aligned = jax.random.normal(k_aligned, (1024, 1), jnp.float32)
    y_aligned = jax.block_until_ready(
        logistic_reg_forward(x_aligned, weight, bias, use_pallas=True)
    )
    ref_aligned = x_aligned @ weight.T + bias
    assert y_aligned.shape == (1024, 1)
    assert jnp.allclose(y_aligned, ref_aligned, atol=1e-6), "aligned Pallas path mismatch"

    # Case 3: force Pallas, ragged N -> pad only to 128, grid of 2 tiles with a
    # masked partial last block.
    x_ragged = jax.random.normal(k_ragged, (2500, 1), jnp.float32)
    y_ragged = jax.block_until_ready(
        logistic_reg_forward(x_ragged, weight, bias, use_pallas=True)
    )
    ref_ragged = x_ragged @ weight.T + bias
    assert y_ragged.shape == (2500, 1)
    assert jnp.allclose(y_ragged, ref_ragged, atol=1e-6), "ragged Pallas path mismatch"

    print("KERNEL_OK")
</pallas_src>

<mosaic_0001>
module attributes {stable_mosaic.version = 11 : i64} {
  func.func @_linear_kernel(%arg0: i32, %arg1: memref<1x1xf32, #tpu.memory_space<smem>>, %arg2: memref<1x1xf32, #tpu.memory_space<smem>>, %arg3: memref<8x128xf32, #tpu.memory_space<vmem>>, %arg4: memref<8x128xf32, #tpu.memory_space<vmem>>) attributes {dimension_semantics = [#tpu.dimension_semantics<parallel>], iteration_bounds = array<i64: 1>, scalar_prefetch = 0 : i64, scratch_operands = 0 : i64, tpu.core_type = #tpu.core_type<tc>, window_params = [{transform_indices = @transform_0, window_bounds = array<i64: 1, 1>}, {transform_indices = @transform_1, window_bounds = array<i64: 1, 1>}, {transform_indices = @transform_2, window_bounds = array<i64: 8, 128>}, {transform_indices = @transform_3, window_bounds = array<i64: 8, 128>}]} {
    %c0 = arith.constant 0 : index
    %c0_0 = arith.constant 0 : index
    %0 = memref.load %arg1[%c0, %c0_0] : memref<1x1xf32, #tpu.memory_space<smem>>
    %c0_1 = arith.constant 0 : index
    %c0_2 = arith.constant 0 : index
    %1 = memref.load %arg2[%c0_1, %c0_2] : memref<1x1xf32, #tpu.memory_space<smem>>
    %c0_3 = arith.constant 0 : index
    %c0_4 = arith.constant 0 : index
    %2 = vector.load %arg3[%c0_3, %c0_4] : memref<8x128xf32, #tpu.memory_space<vmem>>, vector<8x128xf32>
    %3 = vector.broadcast %0 : f32 to vector<8x128xf32>
    %4 = arith.mulf %2, %3 : vector<8x128xf32>
    %5 = vector.broadcast %1 : f32 to vector<8x128xf32>
    %6 = arith.addf %4, %5 : vector<8x128xf32>
    %c0_5 = arith.constant 0 : index
    %c0_6 = arith.constant 0 : index
    %7 = vector.load %arg4[%c0_5, %c0_6] : memref<8x128xf32, #tpu.memory_space<vmem>>, vector<8x128xf32>
    tpu.vector_store %arg4[%c0_5, %c0_6], %6 {strides = array<i32>} : memref<8x128xf32, #tpu.memory_space<vmem>>, vector<8x128xf32>,
    return
  }
  func.func @transform_0(%arg0: i32) -> (i32, i32) {
    %c0_i32 = arith.constant 0 : i32
    %c0_i32_0 = arith.constant 0 : i32
    %c0_i32_1 = arith.constant 0 : i32
    return %c0_i32, %c0_i32_0 : i32, i32
  }
  func.func @transform_1(%arg0: i32) -> (i32, i32) {
    %c0_i32 = arith.constant 0 : i32
    %c0_i32_0 = arith.constant 0 : i32
    %c0_i32_1 = arith.constant 0 : i32
    return %c0_i32, %c0_i32_0 : i32, i32
  }
  func.func @transform_2(%arg0: i32) -> (i32, i32) {
    %c0_i32 = arith.constant 0 : i32
    %c0_i32_0 = arith.constant 0 : i32
    return %arg0, %c0_i32 : i32, i32
  }
  func.func @transform_3(%arg0: i32) -> (i32, i32) {
    %c0_i32 = arith.constant 0 : i32
    %c0_i32_0 = arith.constant 0 : i32
    return %arg0, %c0_i32 : i32, i32
  }
}

</mosaic_0001>

<bundles_post_ra>
// kernel: tpu_custom_call.1
= control target key start
LH: loop header
LB: loop body
LE: loop exit
PB: predicated region body
PF: predicated region fallthrough
CT: control target
= control target key end

     0   :  { %10 = vsyncpa [#allocation5], 0  ;;  %s132_s0 = inlined_call_operand.<no memory space> [shape: f32[1,1], index: 0, kind: input, shape index: {}]   ;;  %s133_s1 = inlined_call_operand.<no memory space> [shape: f32[1,1], index: 1, kind: input, shape index: {}]   ;;  %s134_s2 = inlined_call_operand.hbm [shape: f32[8,128], index: 2, kind: input, shape index: {}]   ;;  %s135_s3 = inlined_call_operand.hbm [shape: f32[8,128], index: 3, kind: output, shape index: {}]  }
   0x1   :  { %11 = vsyncpa [#allocation6], 0  ;;  %s98_s12 = smov [#allocation4]  }
   0x2   :  { %s22_s13 = sshll.u32 %s98_s12, 4  ;;  %s23_s13 = int_to_ptr.vmem [resolvable:$true] %s22_s13 }
   0x3   :  { %s62_s14 = scalar_lea.vmem %s23_s13, 128  ;;  %p67_p1 = scmp.lt.s32.totalorder %s23_s13, %s23_s13 }
   0x4   :  { %p63_p0 = scmp.ne.s32.totalorder %s23_s13, %s62_s14  ;;  %p68_p2 = scmp.lt.s32.totalorder %s62_s14, %s62_s14 }
   0x6   :  { %p69_p3 = por %p68_p2, %p67_p1 }
   0x8   :  { %p70_p4 = pnand %p69_p3, %p63_p0 }
   0xa   :  { %73 = shalt.err (!%p70_p4)
}
   0xb   :  { %25 = dma.hbm_to_vmem [thread:$0]  %s134_s2, 128, %s23_s13, [#allocation5]  }
   0xc   :  { %94 = dma.done.wait [#allocation5], 128  }
   0xd   :  { %95 = vsyncadd [#allocation5], 4294967168  ;;  %v32_v0 = vstv %s132_s0  ;;  %v31_v1 = vld [vmem:[#allocation4] sm:$0xff]  ;;  %v34_v2 = vstv %s133_s1  ;;  %s99_s21 = smov [#allocation7]  }
   0xe   :  { %s43_s22 = sshll.u32 %s99_s21, 4  ;;  %v33_v3 = vmul.f32 %v32_v0, %v31_v1  ;;  %s44_s22 = int_to_ptr.vmem [resolvable:$true] %s43_s22 }
   0xf   :  { %s74_s23 = scalar_lea.vmem %s44_s22, 128  ;;  %p79_p6 = scmp.lt.s32.totalorder %s44_s22, %s44_s22 }
  0x10   :  { %v35_v4 = vadd.f32 %v34_v2, %v33_v3  ;;  %p75_p5 = scmp.ne.s32.totalorder %s44_s22, %s74_s23  ;;  %p80_p7 = scmp.lt.s32.totalorder %s74_s23, %s74_s23 }
  0x12   :  { %36 = vst [vmem:[#allocation7] sm:$0xff] %v35_v4  ;;  %p81_p8 = por %p80_p7, %p79_p6 }
  0x14   :  { %p82_p9 = pnand %p81_p8, %p75_p5 }
  0x16   :  { %85 = shalt.err (!%p82_p9)
}
  0x17   :  { %46 = dma.vmem_to_hbm [thread:$0]  %s44_s22, 128, %s135_s3, [#allocation6]  }
  0x18   :  { %96 = dma.done.wait [#allocation6], 128  }
  0x19   :  { %97 = vsyncadd [#allocation6], 4294967168 }
  0x1a   :  { %50 = vsyncpa [#allocation5], 1 }
  0x1b   :  { %51 = vsyncpa [#allocation6], 1 }

</bundles_post_ra>
